<compile_context>
chip_gen: v6e
topology: v6e:2x2x1
jax: 0.10.0
libtpu: 0.0.40
codegen_flags: <defaults>
</compile_context>

<pallas_src>
import math

import jax
import jax.numpy as jnp
from jax import lax
from jax.experimental import pallas as pl
from jax.experimental.pallas import tpu as pltpu


def _generator_kernel(bike_adj_ref, bike_x_ref, taxi_adj_ref, taxi_x_ref,
                      w_ref, bike_o_ref, taxi_o_ref):
    """Single invocation (no grid): both modes, full (B, W) problem in VMEM.

    bike/taxi adj refs: (B, W, N, N)   bike/taxi x refs: (B, W, N, F_in)
    w_ref: (W, F_in, F_out)            outputs: (B, W, N, F_out) each
    """
    B, W, N, _ = bike_adj_ref.shape
    F_in = bike_x_ref.shape[-1]
    F_out = w_ref.shape[-1]
    G = B * W

    # gcn1 weights tiled once over the fused (batch*window) group axis: group
    # g = b*W + w maps to window w, exactly the per-window weight the reference
    # broadcast produces.  Built once, shared by both modes.
    # (The reference's `weights[:, -window_size:, :, :]` slice is a no-op here
    # since forward always sees the full window_size.)
    w_g = jnp.tile(w_ref[...], (B, 1, 1))              # (G, F_in, F_out)

    def one_mode(adj_ref, x_ref, o_ref):
        adj = adj_ref[...]                             # (B, W, N, N)
        x = x_ref[...]                                 # (B, W, N, F_in)

        # A' = A + I ;  d = rsqrt(rowsum(A')) = rsqrt(rowsum(A) + 1)
        deg = jnp.sum(adj, axis=-1, keepdims=True) + 1.0   # (B, W, N, 1)
        d = lax.rsqrt(deg)                                  # EUP rsqrt

        # A_hat @ X with the identity folded in:
        #   D (A + I) D X = d * (A @ (d*X) + (d*X))
        dx = (d * x).reshape(G, N, F_in)               # D @ X, groups fused
        adx = jnp.einsum('gij,gjf->gif',
                         adj.reshape(G, N, N), dx,
                         preferred_element_type=jnp.float32)
        y = d.reshape(G, N, 1) * (adx + dx)            # A_hat @ X, (G, N, F_in)

        # (A_hat @ X) @ W_gcn1 as ONE batched contraction (no per-window loop).
        out = jnp.einsum('gni,gio->gno', y, w_g,
                         preferred_element_type=jnp.float32)
        o_ref[...] = out.reshape(B, W, N, F_out).astype(o_ref.dtype)

    one_mode(bike_adj_ref, bike_x_ref, bike_o_ref)
    one_mode(taxi_adj_ref, taxi_x_ref, taxi_o_ref)


def generator_forward(bike_in_shots, bike_adj, taxi_in_shots, taxi_adj,
                      connect, gcn1_weights):
    """Pallas equivalent of Generator.forward.

    Returns (bike_gcn_output, taxi_gcn_output), each (B, W, N, F_out).
    `connect` is accepted but unused, matching the reference forward.
    """
    del connect  # unused by the reference forward pass
    B, W, N, _ = bike_adj.shape
    F_out = gcn1_weights.shape[-1]

    out_sds = jax.ShapeDtypeStruct((B, W, N, F_out), jnp.float32)
    vmem = pl.BlockSpec(memory_space=pltpu.MemorySpace.VMEM)

    bike_out, taxi_out = pl.pallas_call(
        _generator_kernel,
        out_shape=(out_sds, out_sds),
        in_specs=[vmem, vmem, vmem, vmem, vmem],
        out_specs=(vmem, vmem),
    )(bike_adj, bike_in_shots, taxi_adj, taxi_in_shots, gcn1_weights)

    return bike_out, taxi_out


def _reference_forward(bike_in_shots, bike_adj, taxi_in_shots, taxi_adj, w):
    """Pure-JAX transcription of the PyTorch forward (incl. merged block adj)."""
    B, W, N, _ = bike_adj.shape
    eye = jnp.broadcast_to(jnp.eye(N, dtype=jnp.float32), (B, W, N, N))

    def norm(a):
        a = a + eye
        diag = jnp.broadcast_to(jnp.sum(a, -1, keepdims=True) ** -0.5,
                                a.shape) * eye
        return diag @ a @ diag

    bike_hat = norm(bike_adj)
    taxi_hat = norm(taxi_adj)
    zeros = jnp.zeros((B, W, N, N), jnp.float32)
    top = jnp.concatenate([bike_hat, zeros], axis=-1)
    bottom = jnp.concatenate([zeros, taxi_hat], axis=-1)
    adj = jnp.concatenate([top, bottom], axis=-2)             # (B, W, 2N, 2N)
    in_shots = jnp.concatenate([bike_in_shots, taxi_in_shots], axis=-2)
    weights = jnp.broadcast_to(w[None], (B,) + w.shape)
    out = adj @ in_shots @ weights                            # (B, W, 2N, F_out)
    return out[:, :, :N, :], out[:, :, N:, :]


if __name__ == "__main__":
    # Small shapes consistent with the module.
    B, W, N, F_in, F_out = 2, 3, 16, 8, 32

    key = jax.random.PRNGKey(0)
    k1, k2, k3, k4, kw = jax.random.split(key, 5)

    bike_in_shots = jax.random.normal(k1, (B, W, N, F_in), jnp.float32)
    taxi_in_shots = jax.random.normal(k2, (B, W, N, F_in), jnp.float32)
    # Non-negative adjacencies (degrees stay positive after +I).
    bike_adj = jax.random.uniform(k3, (B, W, N, N), jnp.float32)
    taxi_adj = jax.random.uniform(k4, (B, W, N, N), jnp.float32)
    connect = None  # unused by the forward pass

    # Deterministic xavier_uniform-style init for gcn1.weights: (W, F_in, F_out).
    fan_in, fan_out = F_in * F_out, W * F_out
    bound = math.sqrt(6.0 / (fan_in + fan_out))
    gcn1_weights = jax.random.uniform(kw, (W, F_in, F_out), jnp.float32,
                                      minval=-bound, maxval=bound)
    # TODO(synk): gcn2 weights exist in __init__ but gcn2 is never called in
    # forward, so they are intentionally not materialized here.

    bike_out, taxi_out = generator_forward(
        bike_in_shots, bike_adj, taxi_in_shots, taxi_adj, connect, gcn1_weights)
    bike_out = jax.block_until_ready(bike_out)
    taxi_out = jax.block_until_ready(taxi_out)

    # Cross-check against a pure-JAX transcription of the PyTorch math.
    ref_bike, ref_taxi = _reference_forward(
        bike_in_shots, bike_adj, taxi_in_shots, taxi_adj, gcn1_weights)
    assert bike_out.shape == (B, W, N, F_out)
    assert taxi_out.shape == (B, W, N, F_out)
    assert jnp.allclose(bike_out, ref_bike, atol=1e-4, rtol=1e-4)
    assert jnp.allclose(taxi_out, ref_taxi, atol=1e-4, rtol=1e-4)

    print("KERNEL_OK")
</pallas_src>

<mosaic_0001>
module attributes {stable_mosaic.version = 11 : i64} {
  func.func @_generator_kernel(%arg0: memref<2x3x16x16xf32, #tpu.memory_space<vmem>>, %arg1: memref<2x3x16x8xf32, #tpu.memory_space<vmem>>, %arg2: memref<2x3x16x16xf32, #tpu.memory_space<vmem>>, %arg3: memref<2x3x16x8xf32, #tpu.memory_space<vmem>>, %arg4: memref<3x8x32xf32, #tpu.memory_space<vmem>>, %arg5: memref<2x3x16x32xf32, #tpu.memory_space<vmem>>, %arg6: memref<2x3x16x32xf32, #tpu.memory_space<vmem>>) attributes {dimension_semantics = [], scalar_prefetch = 0 : i64, scratch_operands = 0 : i64, tpu.core_type = #tpu.core_type<tc>} {
    %c0 = arith.constant 0 : index
    %c0_0 = arith.constant 0 : index
    %c0_1 = arith.constant 0 : index
    %0 = vector.load %arg4[%c0, %c0_0, %c0_1] : memref<3x8x32xf32, #tpu.memory_space<vmem>>, vector<3x8x32xf32>
    %1 = tpu.concatenate %0, %0 in 0 : vector<3x8x32xf32>, vector<3x8x32xf32> -> vector<6x8x32xf32>
    %c0_2 = arith.constant 0 : index
    %c0_3 = arith.constant 0 : index
    %c0_4 = arith.constant 0 : index
    %c0_5 = arith.constant 0 : index
    %2 = vector.load %arg0[%c0_2, %c0_3, %c0_4, %c0_5] : memref<2x3x16x16xf32, #tpu.memory_space<vmem>>, vector<2x3x16x16xf32>
    %c0_6 = arith.constant 0 : index
    %c0_7 = arith.constant 0 : index
    %c0_8 = arith.constant 0 : index
    %c0_9 = arith.constant 0 : index
    %3 = vector.load %arg1[%c0_6, %c0_7, %c0_8, %c0_9] : memref<2x3x16x8xf32, #tpu.memory_space<vmem>>, vector<2x3x16x8xf32>
    %cst = arith.constant dense<0.000000e+00> : vector<2x3x16xf32>
    %4 = vector.multi_reduction <add>, %2, %cst [3] : vector<2x3x16x16xf32> to vector<2x3x16xf32>
    %5 = vector.shape_cast %4 : vector<2x3x16xf32> to vector<2x3x16x1xf32>
    %cst_10 = arith.constant 1.000000e+00 : f32
    %6 = vector.broadcast %cst_10 : f32 to vector<2x3x16x1xf32>
    %7 = arith.addf %5, %6 : vector<2x3x16x1xf32>
    %8 = math.rsqrt %7 : vector<2x3x16x1xf32>
    %9 = vector.broadcast %8 : vector<2x3x16x1xf32> to vector<2x3x16x8xf32>
    %10 = arith.mulf %9, %3 : vector<2x3x16x8xf32>
    %11 = vector.shape_cast %10 : vector<2x3x16x8xf32> to vector<6x16x8xf32>
    %12 = vector.shape_cast %2 : vector<2x3x16x16xf32> to vector<6x16x16xf32>
    "tpu.trace_start"() <{level = 10 : i32, message = "gij,gjf->gif"}> : () -> ()
    %cst_11 = arith.constant dense<0.000000e+00> : vector<6x16x8xf32>
    %13 = tpu.matmul %12, %11, %cst_11 {dimension_numbers = #tpu.dot_dimension_numbers<[2], [1], [1], [2], [0, 0, 0, 1, 1, 2], [0], [0]>} : vector<6x16x16xf32>, vector<6x16x8xf32>, vector<6x16x8xf32> -> vector<6x16x8xf32>
    "tpu.trace_stop"() : () -> ()
    %14 = vector.shape_cast %8 : vector<2x3x16x1xf32> to vector<6x16x1xf32>
    %15 = arith.addf %13, %11 : vector<6x16x8xf32>
    %16 = vector.broadcast %14 : vector<6x16x1xf32> to vector<6x16x8xf32>
    %17 = arith.mulf %16, %15 : vector<6x16x8xf32>
    "tpu.trace_start"() <{level = 10 : i32, message = "gni,gio->gno"}> : () -> ()
    %cst_12 = arith.constant dense<0.000000e+00> : vector<6x16x32xf32>
    %18 = tpu.matmul %17, %1, %cst_12 {dimension_numbers = #tpu.dot_dimension_numbers<[2], [1], [1], [2], [0, 0, 0, 1, 1, 2], [0], [0]>} : vector<6x16x8xf32>, vector<6x8x32xf32>, vector<6x16x32xf32> -> vector<6x16x32xf32>
    "tpu.trace_stop"() : () -> ()
    %19 = vector.shape_cast %18 : vector<6x16x32xf32> to vector<2x3x16x32xf32>
    %c0_13 = arith.constant 0 : index
    %c0_14 = arith.constant 0 : index
    %c0_15 = arith.constant 0 : index
    %c0_16 = arith.constant 0 : index
    %20 = vector.load %arg5[%c0_13, %c0_14, %c0_15, %c0_16] : memref<2x3x16x32xf32, #tpu.memory_space<vmem>>, vector<2x3x16x32xf32>
    tpu.vector_store %arg5[%c0_13, %c0_14, %c0_15, %c0_16], %19 {strides = array<i32>} : memref<2x3x16x32xf32, #tpu.memory_space<vmem>>, vector<2x3x16x32xf32>,
    %c0_17 = arith.constant 0 : index
    %c0_18 = arith.constant 0 : index
    %c0_19 = arith.constant 0 : index
    %c0_20 = arith.constant 0 : index
    %21 = vector.load %arg2[%c0_17, %c0_18, %c0_19, %c0_20] : memref<2x3x16x16xf32, #tpu.memory_space<vmem>>, vector<2x3x16x16xf32>
    %c0_21 = arith.constant 0 : index
    %c0_22 = arith.constant 0 : index
    %c0_23 = arith.constant 0 : index
    %c0_24 = arith.constant 0 : index
    %22 = vector.load %arg3[%c0_21, %c0_22, %c0_23, %c0_24] : memref<2x3x16x8xf32, #tpu.memory_space<vmem>>, vector<2x3x16x8xf32>
    %cst_25 = arith.constant dense<0.000000e+00> : vector<2x3x16xf32>
    %23 = vector.multi_reduction <add>, %21, %cst_25 [3] : vector<2x3x16x16xf32> to vector<2x3x16xf32>
    %24 = vector.shape_cast %23 : vector<2x3x16xf32> to vector<2x3x16x1xf32>
    %cst_26 = arith.constant 1.000000e+00 : f32
    %25 = vector.broadcast %cst_26 : f32 to vector<2x3x16x1xf32>
    %26 = arith.addf %24, %25 : vector<2x3x16x1xf32>
    %27 = math.rsqrt %26 : vector<2x3x16x1xf32>
    %28 = vector.broadcast %27 : vector<2x3x16x1xf32> to vector<2x3x16x8xf32>
    %29 = arith.mulf %28, %22 : vector<2x3x16x8xf32>
    %30 = vector.shape_cast %29 : vector<2x3x16x8xf32> to vector<6x16x8xf32>
    %31 = vector.shape_cast %21 : vector<2x3x16x16xf32> to vector<6x16x16xf32>
    "tpu.trace_start"() <{level = 10 : i32, message = "gij,gjf->gif"}> : () -> ()
    %cst_27 = arith.constant dense<0.000000e+00> : vector<6x16x8xf32>
    %32 = tpu.matmul %31, %30, %cst_27 {dimension_numbers = #tpu.dot_dimension_numbers<[2], [1], [1], [2], [0, 0, 0, 1, 1, 2], [0], [0]>} : vector<6x16x16xf32>, vector<6x16x8xf32>, vector<6x16x8xf32> -> vector<6x16x8xf32>
    "tpu.trace_stop"() : () -> ()
    %33 = vector.shape_cast %27 : vector<2x3x16x1xf32> to vector<6x16x1xf32>
    %34 = arith.addf %32, %30 : vector<6x16x8xf32>
    %35 = vector.broadcast %33 : vector<6x16x1xf32> to vector<6x16x8xf32>
    %36 = arith.mulf %35, %34 : vector<6x16x8xf32>
    "tpu.trace_start"() <{level = 10 : i32, message = "gni,gio->gno"}> : () -> ()
    %cst_28 = arith.constant dense<0.000000e+00> : vector<6x16x32xf32>
    %37 = tpu.matmul %36, %1, %cst_28 {dimension_numbers = #tpu.dot_dimension_numbers<[2], [1], [1], [2], [0, 0, 0, 1, 1, 2], [0], [0]>} : vector<6x16x8xf32>, vector<6x8x32xf32>, vector<6x16x32xf32> -> vector<6x16x32xf32>
    "tpu.trace_stop"() : () -> ()
    %38 = vector.shape_cast %37 : vector<6x16x32xf32> to vector<2x3x16x32xf32>
    %c0_29 = arith.constant 0 : index
    %c0_30 = arith.constant 0 : index
    %c0_31 = arith.constant 0 : index
    %c0_32 = arith.constant 0 : index
    %39 = vector.load %arg6[%c0_29, %c0_30, %c0_31, %c0_32] : memref<2x3x16x32xf32, #tpu.memory_space<vmem>>, vector<2x3x16x32xf32>
    tpu.vector_store %arg6[%c0_29, %c0_30, %c0_31, %c0_32], %38 {strides = array<i32>} : memref<2x3x16x32xf32, #tpu.memory_space<vmem>>, vector<2x3x16x32xf32>,
    return
  }
}

</mosaic_0001>

<bundles_post_ra>
// kernel: tpu_custom_call.1
= control target key start
LH: loop header
LB: loop body
LE: loop exit
PB: predicated region body
PF: predicated region fallthrough
CT: control target
= control target key end

     0   :  { %12 = vsyncpa [#allocation3], 0  ;;  %vm51_vm0 = vcmask 130048   ;;  %s3252_s0 = inlined_call_operand.vmem [shape: f32[2,3,16,16], index: 0, kind: input, shape index: {}]   ;;  %s3253_s1 = inlined_call_operand.vmem [shape: f32[2,3,16,8], index: 1, kind: input, shape index: {}]   ;;  %s3254_s2 = inlined_call_operand.vmem [shape: f32[2,3,16,16], index: 2, kind: input, shape index: {}]   ;;  %s3255_s3 = inlined_call_operand.vmem [shape: f32[2,3,16,8], index: 3, kind: input, shape index: {}]   ;;  %s3256_s4 = inlined_call_operand.vmem [shape: f32[3,8,32], index: 4, kind: input, shape index: {}]   ;;  %s3257_s5 = inlined_call_operand.hbm [shape: f32[2,3,16,32], index: 5, kind: output, shape index: {0}]   ;;  %s3258_s6 = inlined_call_operand.hbm [shape: f32[2,3,16,32], index: 6, kind: output, shape index: {1}]  }
   0x1   :  { %v2660_v0 = vld [vmem:[%s3252_s0 + $0x8] sm:$0xff]  ;;  %v27_v1 = vld [vmem:[%s3252_s0] sm:$0xff]  ;;  %v2668_v2 = vld [vmem:[%s3252_s0 + $0x18] sm:$0xff] }
   0x2   :  { %v55_v3 = vsel %vm51_vm0, %v2660_v0, 0.0  ;;  %v52_v4 = vsel %vm51_vm0, %v27_v1, 0.0  ;;  %v29_v5 = vld [vmem:[%s3252_s0 + $0x10] sm:$0xff]  ;;  %2382 = vmatprep.mubr.msk.f32.mxu0 %vm51_vm0, %v27_v1  ;;  %v61_v6 = vsel %vm51_vm0, %v2668_v2, 0.0  ;;  %v2684_v8 = vld [vmem:[%s3252_s0 + $0x28] sm:$0xff]  ;;  %v2689_v9 = vld [vmem:[%s3252_s0 + $0x38] sm:$0xff] }
   0x3   :  { %56 = vadd.xlane.f32.xlu0 %v55_v3  ;;  %53 = vadd.xlane.f32.xlu1 %v52_v4  ;;  %v58_v7 = vsel %vm51_vm0, %v29_v5, 0.0 }
   0x4   :  { %2389 = vmatprep.mubr.msk.f32.mxu1 %vm51_vm0, %v29_v5 }
   0x5   :  { %13 = vsyncpa [#allocation5], 0  ;;  %v67_v10 = vsel %vm51_vm0, %v2684_v8, 0.0  ;;  %v73_v11 = vsel %vm51_vm0, %v2689_v9, 0.0  ;;  %v2698_v12 = vld [vmem:[%s3252_s0 + $0x20] sm:$0xff]  ;;  %v2703_v13 = vld [vmem:[%s3252_s0 + $0x30] sm:$0xff] }
   0x6   :  { %v64_v14 = vsel %vm51_vm0, %v2698_v12, 0.0  ;;  %v70_v15 = vsel %vm51_vm0, %v2703_v13, 0.0  ;;  %v2712_v16 = vld [vmem:[%s3252_s0 + $0x48] sm:$0xff]  ;;  %v2717_v17 = vld [vmem:[%s3252_s0 + $0x58] sm:$0xff]  ;;  %v2726_v20 = vld [vmem:[%s3252_s0 + $0x40] sm:$0xff]  ;;  %vm622_vm1 = vcmask 64512  }
   0x7   :  { %62 = vadd.xlane.f32.xlu0 %v61_v6  ;;  %59 = vadd.xlane.f32.xlu1 %v58_v7  ;;  %v79_v18 = vsel %vm51_vm0, %v2712_v16, 0.0  ;;  %v85_v19 = vsel %vm51_vm0, %v2717_v17, 0.0  ;;  %v2731_v21 = vld [vmem:[%s3252_s0 + $0x50] sm:$0xff]  ;;  %v76_v22 = vsel %vm51_vm0, %v2726_v20, 0.0  ;;  %v2740_v24 = vld [vmem:[%s3254_s2 + $0x8] sm:$0xff]  ;;  %v2745_v25 = vld [vmem:[%s3254_s2 + $0x18] sm:$0xff] }
   0x8   :  { %v82_v23 = vsel %vm51_vm0, %v2731_v21, 0.0  ;;  %v2750_v26 = vld [vmem:[%s3254_s2] sm:$0xff]  ;;  %v1149_v27 = vsel %vm51_vm0, %v2740_v24, 0.0  ;;  %v1155_v28 = vsel %vm51_vm0, %v2745_v25, 0.0  ;;  %v2759_v29 = vld [vmem:[%s3254_s2 + $0x10] sm:$0xff]  ;;  %v2768_v32 = vld [vmem:[%s3254_s2 + $0x28] sm:$0xff] }
   0x9   :  { %v1146_v30 = vsel %vm51_vm0, %v2750_v26, 0.0  ;;  %v1152_v31 = vsel %vm51_vm0, %v2759_v29, 0.0  ;;  %v2773_v33 = vld [vmem:[%s3254_s2 + $0x38] sm:$0xff]  ;;  %v1161_v34 = vsel %vm51_vm0, %v2768_v32, 0.0  ;;  %v2782_v36 = vld [vmem:[%s3254_s2 + $0x20] sm:$0xff]  ;;  %v2787_v37 = vld [vmem:[%s3254_s2 + $0x30] sm:$0xff] }
   0xa   :  { %v1167_v35 = vsel %vm51_vm0, %v2773_v33, 0.0  ;;  %v1158_v38 = vsel %vm51_vm0, %v2782_v36, 0.0  ;;  %v1164_v39 = vsel %vm51_vm0, %v2787_v37, 0.0  ;;  %v2796_v40 = vld [vmem:[%s3254_s2 + $0x48] sm:$0xff]  ;;  %v2801_v41 = vld [vmem:[%s3254_s2 + $0x58] sm:$0xff]  ;;  %v2810_v44 = vld [vmem:[%s3254_s2 + $0x40] sm:$0xff] }
   0xb   :  { %68 = vadd.xlane.f32.xlu0 %v67_v10  ;;  %74 = vadd.xlane.f32.xlu1 %v73_v11  ;;  %v1173_v42 = vsel %vm51_vm0, %v2796_v40, 0.0  ;;  %v1179_v43 = vsel %vm51_vm0, %v2801_v41, 0.0  ;;  %v2815_v45 = vld [vmem:[%s3254_s2 + $0x50] sm:$0xff]  ;;  %v1170_v46 = vsel %vm51_vm0, %v2810_v44, 0.0  ;;  %v40_v1 = vld [vmem:[%s3253_s1 + $0x8] sm:$0xff]  ;;  %v39_v6 = vld [vmem:[%s3253_s1] sm:$0xff] }
   0xc   :  { %v1176_v47 = vsel %vm51_vm0, %v2815_v45, 0.0  ;;  %vm1109_vm2 = vcmask 261120  }
   0xf   :  { %65 = vadd.xlane.f32.xlu0 %v64_v14  ;;  %71 = vadd.xlane.f32.xlu1 %v70_v15  ;;  %v42_v15 = vld [vmem:[%s3253_s1 + $0x18] sm:$0xff] }
  0x13   :  { %80 = vadd.xlane.f32.xlu0 %v79_v18  ;;  %86 = vadd.xlane.f32.xlu1 %v85_v19 }
  0x17   :  { %77 = vadd.xlane.f32.xlu0 %v76_v22  ;;  %83 = vadd.xlane.f32.xlu1 %v82_v23 }
  0x1b   :  { %1150 = vadd.xlane.f32.xlu0 %v1149_v27  ;;  %1156 = vadd.xlane.f32.xlu1 %v1155_v28  ;;  %v41_v27 = vld [vmem:[%s3253_s1 + $0x10] sm:$0xff] }
  0x1f   :  { %1147 = vadd.xlane.f32.xlu0 %v1146_v30  ;;  %1153 = vadd.xlane.f32.xlu1 %v1152_v31 }
  0x23   :  { %1162 = vadd.xlane.f32.xlu0 %v1161_v34  ;;  %1168 = vadd.xlane.f32.xlu1 %v1167_v35  ;;  %v44_v35 = vld [vmem:[%s3253_s1 + $0x28] sm:$0xff] }
  0x27   :  { %1159 = vadd.xlane.f32.xlu0 %v1158_v38  ;;  %1165 = vadd.xlane.f32.xlu1 %v1164_v39  ;;  %v46_v39 = vld [vmem:[%s3253_s1 + $0x38] sm:$0xff] }
  0x2b   :  { %1174 = vadd.xlane.f32.xlu0 %v1173_v42  ;;  %1180 = vadd.xlane.f32.xlu1 %v1179_v43 }
  0x2f   :  { %1171 = vadd.xlane.f32.xlu0 %v1170_v46  ;;  %1177 = vadd.xlane.f32.xlu1 %v1176_v47  ;;  %v43_v47 = vld [vmem:[%s3253_s1 + $0x20] sm:$0xff] }
  0x8c   :  { %v57_v48 = vpop.xlane.xlu0 %56  ;;  %v54_v49 = vpop.xlane.xlu1 %53 }
  0x8d   :  { %v89_v50 = vadd.f32 1.0, %v57_v48  ;;  %v88_v51 = vadd.f32 1.0, %v54_v49 }
  0x8f   :  { %2526 = vrsqrt.f32 %v89_v50 }
  0x90   :  { %2528 = vrsqrt.f32 %v88_v51  ;;  %v63_v52 = vpop.xlane.xlu0 %62  ;;  %v60_v53 = vpop.xlane.xlu1 %59  ;;  %v48_v51 = vld [vmem:[%s3253_s1 + $0x48] sm:$0xff] }
  0x91   :  { %v91_v54 = vadd.f32 1.0, %v63_v52  ;;  %v90_v55 = vadd.f32 1.0, %v60_v53  ;;  %v50_v52 = vld [vmem:[%s3253_s1 + $0x58] sm:$0xff] }
  0x93   :  { %2530 = vrsqrt.f32 %v91_v54 }
  0x94   :  { %2532 = vrsqrt.f32 %v90_v55  ;;  %v69_v56 = vpop.xlane.xlu0 %68  ;;  %v75_v57 = vpop.xlane.xlu1 %74 }
  0x95   :  { %v93_v58 = vadd.f32 1.0, %v69_v56  ;;  %v95_v59 = vadd.f32 1.0, %v75_v57  ;;  %v47_v56 = vld [vmem:[%s3253_s1 + $0x40] sm:$0xff] }
  0x97   :  { %2534 = vrsqrt.f32 %v93_v58 }
  0x98   :  { %2536 = vrsqrt.f32 %v95_v59  ;;  %v66_v60 = vpop.xlane.xlu0 %65  ;;  %v72_v61 = vpop.xlane.xlu1 %71  ;;  %v2971_v59 = vld [vmem:[%s3256_s4 + $0x8] sm:$0xff] }
  0x99   :  { %v92_v62 = vadd.f32 1.0, %v66_v60  ;;  %v94_v63 = vadd.f32 1.0, %v72_v61 }
  0x9b   :  { %2538 = vrsqrt.f32 %v92_v62 }
  0x9c   :  { %v2824_v3 = vpop.eup %2526  ;;  %2540 = vrsqrt.f32 %v94_v63  ;;  %v81_v4 = vpop.xlane.xlu0 %80 }
  0x9d   :  { %v87_v5 = vpop.xlane.xlu1 %86  ;;  %v2829_v7 = vpop.eup %2528  ;;  %v97_v10 = vadd.f32 1.0, %v81_v4  ;;  %v2832_v14 = vmul.f32 %v2824_v3, %v40_v1 }
  0x9e   :  { %v99_v11 = vadd.f32 1.0, %v87_v5  ;;  %v2839_v18 = vmul.f32 %v2829_v7, %v39_v6 }
  0x9f   :  { %2542 = vrsqrt.f32 %v97_v10  ;;  %2378 = vmatprep.subr.mxu0 %v2832_v14 }
  0xa0   :  { %v2841_v19 = vpop.eup %2530  ;;  %2544 = vrsqrt.f32 %v99_v11  ;;  %2379 = vmatpush3.msra.mxu0 %v2832_v14  ;;  %v78_v22 = vpop.xlane.xlu0 %77 }
  0xa1   :  { %v84_v23 = vpop.xlane.xlu1 %83  ;;  %v2847_v28 = vpop.eup %2532  ;;  %v96_v30 = vadd.f32 1.0, %v78_v22  ;;  %2380 = vmatprep.subr.mxu0 %v2839_v18  ;;  %v2851_v34 = vmul.f32 %v2841_v19, %v42_v15 }
  0xa2   :  { %v98_v31 = vadd.f32 1.0, %v84_v23  ;;  %2381 = vmatpush3.msra.mxu0 %v2839_v18  ;;  %v2861_v38 = vmul.f32 %v2847_v28, %v41_v27 }
  0xa3   :  { %2546 = vrsqrt.f32 %v96_v30  ;;  %2383 = vmatmul.mubr.msk.f32.vlgmr.msra.gmra.mxu0 %vm51_vm0, %v2660_v0  ;;  %2385 = vmatprep.subr.mxu1 %v2851_v34 }
  0xa4   :  { %v2866_v42 = vpop.eup %2534  ;;  %2548 = vrsqrt.f32 %v98_v31  ;;  %2386 = vmatpush3.msra.mxu1 %v2851_v34  ;;  %2396 = vmatprep.mubr.msk.f32.mxu0 %vm51_vm0, %v2698_v12  ;;  %v45_v12 = vld [vmem:[%s3253_s1 + $0x30] sm:$0xff] }
  0xa5   :  { %v2871_v43 = vpop.eup %2536  ;;  %2387 = vmatprep.subr.mxu1 %v2861_v38  ;;  %v2875_v0 = vmul.f32 %v2866_v42, %v44_v35  ;;  %v1157_v60 = vpop.xlane.xlu1 %1156 }
  0xa6   :  { %2388 = vmatpush3.msra.mxu1 %v2861_v38  ;;  %v2879_v46 = vmul.f32 %v2871_v43, %v46_v39  ;;  %v1185_v5 = vadd.f32 1.0, %v1157_v60 }
  0xa7   :  { %2390 = vmatmul.mubr.msk.f32.vlgmr.msra.gmra.mxu1 %vm51_vm0, %v2668_v2  ;;  %2392 = vmatprep.subr.mxu0 %v2875_v0 }
  0xa8   :  { %v2890_v48 = vpop.eup %2538  ;;  %2399 = vmatprep.subr.mxu1 %v2879_v46  ;;  %2393 = vmatpush3.msra.mxu0 %v2875_v0 }
  0xa9   :  { %v2894_v49 = vpop.eup %2540  ;;  %2400 = vmatpush3.msra.mxu1 %v2879_v46  ;;  %v2898_v50 = vmul.f32 %v2890_v48, %v43_v47  ;;  %2403 = vmatprep.mubr.msk.f32.mxu1 %vm51_vm0, %v2703_v13  ;;  %v1154_v62 = vpop.xlane.xlu1 %1153 }
  0xaa   :  { %v2903_v2 = vmul.f32 %v2894_v49, %v45_v12  ;;  %v1184_v12 = vadd.f32 1.0, %v1154_v62 }
  0xab   :  { %2394 = vmatprep.subr.mxu0 %v2898_v50 }
  0xac   :  { %v2912_v53 = vpop.eup %2542  ;;  %2401 = vmatprep.subr.mxu1 %v2903_v2  ;;  %2395 = vmatpush3.msra.mxu0 %v2898_v50 }
  0xad   :  { %v2916_v13 = vpop.eup %2544  ;;  %2402 = vmatpush3.msra.mxu1 %v2903_v2  ;;  %2397 = vmatmul.mubr.msk.f32.vlgmr.msra.gmra.mxu0 %vm51_vm0, %v2684_v8  ;;  %v2922_v54 = vmul.f32 %v2912_v53, %v48_v51  ;;  %v49_v8 = vld [vmem:[%s3253_s1 + $0x50] sm:$0xff]  ;;  %v1169_v1 = vpop.xlane.xlu1 %1168 }
  0xae   :  { %2404 = vmatmul.mubr.msk.f32.vlgmr.msra.gmra.mxu1 %vm51_vm0, %v2689_v9  ;;  %v2927_v55 = vmul.f32 %v2916_v13, %v50_v52  ;;  %2410 = vmatprep.mubr.msk.f32.mxu0 %vm51_vm0, %v2726_v20 }
  0xaf   :  { %2406 = vmatprep.subr.mxu0 %v2922_v54  ;;  %2417 = vmatprep.mubr.msk.f32.mxu1 %vm51_vm0, %v2731_v21  ;;  %v2964_v21 = vld [vmem:[%s3256_s4] sm:$0xff] }
  0xb0   :  { %v2940_v9 = vpop.eup %2546  ;;  %2413 = vmatprep.subr.mxu1 %v2927_v55  ;;  %2407 = vmatpush3.msra.mxu0 %v2922_v54 }
  0xb1   :  { %v2944_v57 = vpop.eup %2548  ;;  %2414 = vmatpush3.msra.mxu1 %v2927_v55  ;;  %v2948_v20 = vmul.f32 %v2940_v9, %v47_v56  ;;  %v1166_v22 = vpop.xlane.xlu1 %1165 }
  0xb2   :  { %v2951_v58 = vmul.f32 %v2944_v57, %v49_v8 }
  0xb3   :  { %2408 = vmatprep.subr.mxu0 %v2948_v20 }
  0xb4   :  { %2415 = vmatprep.subr.mxu1 %v2951_v58  ;;  %2409 = vmatpush3.msra.mxu0 %v2948_v20 }
  0xb5   :  { %2416 = vmatpush3.msra.mxu1 %v2951_v58  ;;  %2411 = vmatmul.mubr.msk.f32.vlgmr.msra.gmra.mxu0 %vm51_vm0, %v2712_v16  ;;  %v2979_v16 = vld [vmem:[%s3256_s4 + $0x10] sm:$0xff]  ;;  %v1181_v52 = vpop.xlane.xlu1 %1180 }
  0xb6   :  { %2418 = vmatmul.mubr.msk.f32.vlgmr.msra.gmra.mxu1 %vm51_vm0, %v2717_v17  ;;  %2420 = vmatprep.subr.mxu0 %v2964_v21  ;;  %v1151_v17 = vpop.xlane.xlu0 %1150 }
  0xb7   :  { %2421 = vmatpush3.msra.mxu0 %v2964_v21  ;;  %2425 = vmatprep.subr.mxu1 %v2971_v59  ;;  %v1183_v4 = vadd.f32 1.0, %v1151_v17  ;;  %v1188_v17 = vadd.f32 1.0, %v1166_v22  ;;  %v1137_v22 = vld [vmem:[%s3255_s3 + $0x18] sm:$0xff] }
  0xb8   :  { %2426 = vmatpush3.msra.mxu1 %v2971_v59  ;;  %2430 = vmatprep.subr.mxu0 %v2979_v16 }
  0xb9   :  { %2435 = vmatprep.subr.mxu1 %v2964_v21  ;;  %2550 = vrsqrt.f32 %v1183_v4 }
  0xba   :  { %v1148_v61 = vpop.xlane.xlu0 %1147  ;;  %2552 = vrsqrt.f32 %v1185_v5  ;;  %v1193_v5 = vadd.f32 1.0, %v1181_v52 }
  0xbb   :  { %v1182_v31 = vadd.f32 1.0, %v1148_v61 }
  0xbd   :  { %2554 = vrsqrt.f32 %v1182_v31 }
  0xbe   :  { %v1163_v63 = vpop.xlane.xlu0 %1162  ;;  %2556 = vrsqrt.f32 %v1184_v12 }
  0xc2   :  { %v1160_v10 = vpop.xlane.xlu0 %1159 }
 0x163   :  { %v2384_v6 = vpop.f32.mrf.mxu0 }
 0x164   :  { %v202_v11 = vadd.f32 %v2384_v6, %v2832_v14  ;;  %v1175_v14 = vpop.xlane.xlu0 %1174  ;;  %v1178_v6 = vpop.xlane.xlu1 %1177 }
 0x165   :  { %v196_v15 = vpop.f32.mrf.mxu0  ;;  %v1191_v62 = vadd.f32 1.0, %v1175_v14 }
 0x166   :  { %v197_v23 = vadd.f32 %v196_v15, %v2839_v18  ;;  %v611_v35 = vmul.f32 %v2824_v3, %v202_v11  ;;  %v1187_v18 = vadd.f32 1.0, %v1163_v63 }
 0x167   :  { %v2391_v27 = vpop.f32.mrf.mxu1 }
 0x168   :  { %v610_v30 = vmul.f32 %v2829_v7, %v197_v23  ;;  %v283_v39 = vadd.f32 %v2391_v27, %v2851_v34  ;;  %v1189_v7 = vadd.f32 1.0, %v1169_v1  ;;  %2558 = vrsqrt.f32 %v1187_v18  ;;  %v1172_v1 = vpop.xlane.xlu0 %1171 }
 0x169   :  { %v277_v47 = vpop.f32.mrf.mxu1  ;;  %v1190_v15 = vadd.f32 1.0, %v1172_v1 }
 0x16a   :  { %v278_v51 = vadd.f32 %v277_v47, %v2861_v38  ;;  %2422 = vmatprep.mubr.msk.f32.mxu0 %vm622_vm1, %v610_v30  ;;  %v613_v3 = vmul.f32 %v2841_v19, %v283_v39  ;;  %v1186_v38 = vadd.f32 1.0, %v1160_v10  ;;  %2560 = vrsqrt.f32 %v1189_v7 }
 0x16b   :  { %2423 = vmatmul.mubr.msk.f32.vlgmr.msra.gmra.mxu0 %vm622_vm1, %v611_v35 }
 0x16c   :  { %v612_v56 = vmul.f32 %v2847_v28, %v278_v51  ;;  %2431 = vmatpush3.msra.mxu0 %v2979_v16  ;;  %2562 = vrsqrt.f32 %v1186_v38 }
 0x16d   :  { %v2398_v34 = vpop.f32.mrf.mxu0  ;;  %2440 = vmatprep.subr.mxu0 %v2971_v59  ;;  %2564 = vrsqrt.f32 %v1188_v17 }
 0x16e   :  { %v2405_v8 = vpop.f32.mrf.mxu1  ;;  %2427 = vmatprep.mubr.msk.f32.mxu1 %vm622_vm1, %v612_v56  ;;  %v364_v60 = vadd.f32 %v2398_v34, %v2875_v0  ;;  %v3002_v0 = vpop.eup %2550  ;;  %2566 = vrsqrt.f32 %v1191_v62 }
 0x16f   :  { %v358_v61 = vpop.f32.mrf.mxu0  ;;  %2428 = vmatmul.mubr.msk.f32.vlgmr.msra.gmra.mxu1 %vm622_vm1, %v613_v3  ;;  %v445_v28 = vadd.f32 %v2405_v8, %v2879_v46  ;;  %v1135_v46 = vld [vmem:[%s3255_s3 + $0x8] sm:$0xff]  ;;  %2568 = vrsqrt.f32 %v1193_v5  ;;  %v1141_v3 = vld [vmem:[%s3255_s3 + $0x38] sm:$0xff]  ;;  %v1138_v8 = vld [vmem:[%s3255_s3 + $0x20] sm:$0xff] }
 0x170   :  { %v359_v19 = vadd.f32 %v358_v61, %v2898_v50  ;;  %v439_v63 = vpop.f32.mrf.mxu1  ;;  %2436 = vmatpush3.msra.mxu1 %v2964_v21  ;;  %v3008_v50 = vpop.eup %2552  ;;  %v615_v11 = vmul.f32 %v2866_v42, %v364_v60  ;;  %v3020_v42 = vmul.f32 %v3002_v0, %v1135_v46  ;;  %2570 = vrsqrt.f32 %v1190_v15  ;;  %v1140_v61 = vld [vmem:[%s3255_s3 + $0x30] sm:$0xff] }
 0x171   :  { %v440_v4 = vadd.f32 %v439_v63, %v2903_v2  ;;  %2445 = vmatprep.subr.mxu1 %v2979_v16  ;;  %v617_v23 = vmul.f32 %v2871_v43, %v445_v28  ;;  %v3025_v43 = vmul.f32 %v3008_v50, %v1137_v22  ;;  %v3034_v51 = vpop.eup %2554  ;;  %v1143_v28 = vld [vmem:[%s3255_s3 + $0x48] sm:$0xff]  ;;  %v1144_v5 = vld [vmem:[%s3255_s3 + $0x50] sm:$0xff] }
 0x172   :  { %v614_v10 = vmul.f32 %v2890_v48, %v359_v19  ;;  %v1192_v48 = vadd.f32 1.0, %v1178_v6  ;;  %v3040_v52 = vpop.eup %2556 }
 0x173   :  { %v616_v2 = vmul.f32 %v2894_v49, %v440_v4 }
 0x174   :  { %2432 = vmatprep.mubr.msk.f32.mxu0 %vm622_vm1, %v614_v10  ;;  %2572 = vrsqrt.f32 %v1192_v48 }
 0x175   :  { %2437 = vmatprep.mubr.msk.f32.mxu1 %vm622_vm1, %v616_v2  ;;  %v2412_v27 = vpop.f32.mrf.mxu0  ;;  %2433 = vmatmul.mubr.msk.f32.vlgmr.msra.gmra.mxu0 %vm622_vm1, %v615_v11  ;;  %v3049_v56 = vpop.eup %2558 }
 0x176   :  { %v2419_v49 = vpop.f32.mrf.mxu1  ;;  %2438 = vmatmul.mubr.msk.f32.vlgmr.msra.gmra.mxu1 %vm622_vm1, %v617_v23  ;;  %2441 = vmatpush3.msra.mxu0 %v2971_v59  ;;  %v526_v30 = vadd.f32 %v2412_v27, %v2922_v54  ;;  %v1134_v54 = vld [vmem:[%s3255_s3] sm:$0xff] }
 0x177   :  { %2446 = vmatpush3.msra.mxu1 %v2979_v16  ;;  %2450 = vmatprep.subr.mxu0 %v3020_v42  ;;  %v520_v31 = vpop.f32.mrf.mxu0  ;;  %v607_v35 = vadd.f32 %v2419_v49, %v2927_v55 }
 0x178   :  { %2457 = vmatprep.subr.mxu1 %v3025_v43  ;;  %v521_v39 = vadd.f32 %v520_v31, %v2948_v20  ;;  %v601_v47 = vpop.f32.mrf.mxu1  ;;  %v619_v18 = vmul.f32 %v2912_v53, %v526_v30  ;;  %v1136_v20 = vld [vmem:[%s3255_s3 + $0x10] sm:$0xff]  ;;  %v1139_v53 = vld [vmem:[%s3255_s3 + $0x28] sm:$0xff] }
 0x179   :  { %v602_v12 = vadd.f32 %v601_v47, %v2951_v58  ;;  %v621_v58 = vmul.f32 %v2916_v13, %v607_v35  ;;  %v3064_v13 = vmul.f32 %v3040_v52, %v1136_v20  ;;  %v3078_v38 = vmul.f32 %v3049_v56, %v1139_v53 }
 0x17a   :  { %v618_v14 = vmul.f32 %v2940_v9, %v521_v39  ;;  %v3054_v9 = vmul.f32 %v3034_v51, %v1134_v54 }
 0x17b   :  { %v620_v55 = vmul.f32 %v2944_v57, %v602_v12  ;;  %v3059_v57 = vpop.eup %2560 }
 0x17c   :  { %2442 = vmatprep.mubr.msk.f32.mxu0 %vm622_vm1, %v618_v14  ;;  %v3069_v7 = vpop.eup %2562  ;;  %v3089_v60 = vmul.f32 %v3059_v57, %v1141_v3 }
 0x17d   :  { %2447 = vmatprep.mubr.msk.f32.mxu1 %vm622_vm1, %v620_v55  ;;  %2443 = vmatmul.mubr.msk.f32.vlgmr.msra.gmra.mxu0 %vm622_vm1, %v619_v18  ;;  %v3073_v34 = vpop.eup %2564  ;;  %v3109_v19 = vmul.f32 %v3069_v7, %v1138_v8 }
 0x17e   :  { %2448 = vmatmul.mubr.msk.f32.vlgmr.msra.gmra.mxu1 %vm622_vm1, %v621_v58  ;;  %2451 = vmatpush3.msra.mxu0 %v3020_v42  ;;  %v3083_v17 = vpop.eup %2566 }
 0x17f   :  { %2458 = vmatpush3.msra.mxu1 %v3025_v43  ;;  %2452 = vmatprep.subr.mxu0 %v3054_v9  ;;  %v3097_v62 = vpop.eup %2568  ;;  %v3120_v1 = vmul.f32 %v3083_v17, %v1143_v28 }
 0x180   :  { %2459 = vmatprep.subr.mxu1 %v3064_v13  ;;  %2453 = vmatpush3.msra.mxu0 %v3054_v9  ;;  %v3111_v63 = vpop.eup %2570 }
 0x181   :  { %2460 = vmatpush3.msra.mxu1 %v3064_v13  ;;  %2454 = vmatprep.mubr.msk.f32.mxu0 %vm51_vm0, %v2750_v26  ;;  %v1145_v26 = vld [vmem:[%s3255_s3 + $0x58] sm:$0xff]  ;;  %v3125_v4 = vpop.eup %2572 }
 0x182   :  { %2461 = vmatprep.mubr.msk.f32.mxu1 %vm51_vm0, %v2759_v29  ;;  %2464 = vmatprep.subr.mxu0 %v3078_v38  ;;  %v3117_v29 = vmul.f32 %v3073_v34, %v1140_v61  ;;  %v3147_v10 = vmul.f32 %v3125_v4, %v1144_v5 }
 0x183   :  { %2471 = vmatprep.subr.mxu1 %v3089_v60  ;;  %2455 = vmatmul.mubr.msk.f32.vlgmr.msra.gmra.mxu0 %vm51_vm0, %v2740_v24  ;;  %v1142_v24 = vld [vmem:[%s3255_s3 + $0x40] sm:$0xff]  ;;  %s2618_s3 = smov [#allocation2]  }
 0x184   :  { %2462 = vmatmul.mubr.msk.f32.vlgmr.msra.gmra.mxu1 %vm51_vm0, %v2745_v25  ;;  %2465 = vmatpush3.msra.mxu0 %v3078_v38  ;;  %v3130_v25 = vmul.f32 %v3097_v62, %v1145_v26  ;;  %v3141_v6 = vmul.f32 %v3111_v63, %v1142_v24  ;;  %s2219_s19 = sshll.u32 %s2618_s3, 4  ;;  %s2220_s19 = int_to_ptr.vmem [resolvable:$true] %s2219_s19 }
 0x185   :  { %2472 = vmatpush3.msra.mxu1 %v3089_v60  ;;  %2466 = vmatprep.subr.mxu0 %v3109_v19  ;;  %s2574_s2 = scalar_lea.vmem %s2220_s19, 1536  ;;  %p2579_p1 = scmp.lt.s32.totalorder %s2220_s19, %s2220_s19 }
 0x186   :  { %2473 = vmatprep.subr.mxu1 %v3117_v29  ;;  %2467 = vmatpush3.msra.mxu0 %v3109_v19  ;;  %p2575_p0 = scmp.ne.s32.totalorder %s2220_s19, %s2574_s2  ;;  %p2580_p2 = scmp.lt.s32.totalorder %s2574_s2, %s2574_s2 }
 0x187   :  { %2474 = vmatpush3.msra.mxu1 %v3117_v29  ;;  %2468 = vmatprep.mubr.msk.f32.mxu0 %vm51_vm0, %v2782_v36 }
 0x188   :  { %2475 = vmatprep.mubr.msk.f32.mxu1 %vm51_vm0, %v2787_v37  ;;  %2478 = vmatprep.subr.mxu0 %v3120_v1  ;;  %p2581_p3 = por %p2580_p2, %p2579_p1 }
 0x189   :  { %2485 = vmatprep.subr.mxu1 %v3130_v25  ;;  %2469 = vmatmul.mubr.msk.f32.vlgmr.msra.gmra.mxu0 %vm51_vm0, %v2768_v32 }
 0x18a   :  { %2476 = vmatmul.mubr.msk.f32.vlgmr.msra.gmra.mxu1 %vm51_vm0, %v2773_v33  ;;  %2479 = vmatpush3.msra.mxu0 %v3120_v1  ;;  %p2582_p4 = pnand %p2581_p3, %p2575_p0 }
 0x18b   :  { %2486 = vmatpush3.msra.mxu1 %v3130_v25  ;;  %2480 = vmatprep.subr.mxu0 %v3141_v6 }
 0x18c   :  { %2487 = vmatprep.subr.mxu1 %v3147_v10  ;;  %2481 = vmatpush3.msra.mxu0 %v3141_v6 }
 0x18d   :  { %2488 = vmatpush3.msra.mxu1 %v3147_v10  ;;  %2482 = vmatprep.mubr.msk.f32.mxu0 %vm51_vm0, %v2810_v44 }
 0x18e   :  { %2489 = vmatprep.mubr.msk.f32.mxu1 %vm51_vm0, %v2815_v45  ;;  %2483 = vmatmul.mubr.msk.f32.vlgmr.msra.gmra.mxu0 %vm51_vm0, %v2796_v40 }
 0x18f   :  { %2490 = vmatmul.mubr.msk.f32.vlgmr.msra.gmra.mxu1 %vm51_vm0, %v2801_v41  ;;  %2492 = vmatprep.subr.mxu0 %v2964_v21 }
 0x190   :  { %2497 = vmatprep.subr.mxu1 %v2971_v59  ;;  %2493 = vmatpush3.msra.mxu0 %v2964_v21 }
 0x191   :  { %2498 = vmatpush3.msra.mxu1 %v2971_v59  ;;  %2502 = vmatprep.subr.mxu0 %v2979_v16 }
 0x192   :  { %2507 = vmatprep.subr.mxu1 %v2964_v21 }
 0x22b   :  { %v2424_v32 = vpop.f32.mrf.mxu0 }
 0x22c   :  { %1111 = vst.msk [vmem:[#allocation2 + $0x8] sm:$0xff] %vm1109_vm2, %v2424_v32 }
 0x22d   :  { %v695_v33 = vpop.f32.mrf.mxu0 }
 0x22e   :  { %1110 = vst.msk [vmem:[#allocation2] sm:$0xff] %vm1109_vm2, %v695_v33 }
 0x22f   :  { %v2429_v36 = vpop.f32.mrf.mxu1 }
 0x230   :  { %1113 = vst.msk [vmem:[#allocation2 + $0x18] sm:$0xff] %vm1109_vm2, %v2429_v36 }
 0x231   :  { %v776_v37 = vpop.f32.mrf.mxu1 }
 0x232   :  { %1112 = vst.msk [vmem:[#allocation2 + $0x10] sm:$0xff] %vm1109_vm2, %v776_v37 }
 0x235   :  { %v2434_v40 = vpop.f32.mrf.mxu0 }
 0x236   :  { %1115 = vst.msk [vmem:[#allocation2 + $0x28] sm:$0xff] %vm1109_vm2, %v2434_v40  ;;  %v2439_v41 = vpop.f32.mrf.mxu1 }
 0x237   :  { %1117 = vst.msk [vmem:[#allocation2 + $0x38] sm:$0xff] %vm1109_vm2, %v2439_v41  ;;  %v857_v44 = vpop.f32.mrf.mxu0 }
 0x238   :  { %1114 = vst.msk [vmem:[#allocation2 + $0x20] sm:$0xff] %vm1109_vm2, %v857_v44  ;;  %v938_v45 = vpop.f32.mrf.mxu1 }
 0x239   :  { %1116 = vst.msk [vmem:[#allocation2 + $0x30] sm:$0xff] %vm1109_vm2, %v938_v45 }
 0x23d   :  { %v2444_v46 = vpop.f32.mrf.mxu0 }
 0x23e   :  { %1119 = vst.msk [vmem:[#allocation2 + $0x48] sm:$0xff] %vm1109_vm2, %v2444_v46  ;;  %v2449_v11 = vpop.f32.mrf.mxu1 }
 0x23f   :  { %1121 = vst.msk [vmem:[#allocation2 + $0x58] sm:$0xff] %vm1109_vm2, %v2449_v11  ;;  %v1019_v2 = vpop.f32.mrf.mxu0 }
 0x240   :  { %1118 = vst.msk [vmem:[#allocation2 + $0x40] sm:$0xff] %vm1109_vm2, %v1019_v2  ;;  %v1100_v15 = vpop.f32.mrf.mxu1 }
 0x241   :  { %1120 = vst.msk [vmem:[#allocation2 + $0x50] sm:$0xff] %vm1109_vm2, %v1100_v15 }
 0x243   :  { %v2456_v22 = vpop.f32.mrf.mxu0 }
 0x244   :  { %v2463_v23 = vpop.f32.mrf.mxu1  ;;  %v1296_v48 = vadd.f32 %v2456_v22, %v3020_v42 }
 0x245   :  { %v1290_v27 = vpop.f32.mrf.mxu0  ;;  %v1377_v49 = vadd.f32 %v2463_v23, %v3025_v43 }
 0x246   :  { %v1291_v30 = vadd.f32 %v1290_v27, %v3054_v9  ;;  %v1371_v31 = vpop.f32.mrf.mxu1  ;;  %v1705_v47 = vmul.f32 %v3002_v0, %v1296_v48 }
 0x247   :  { %v1372_v35 = vadd.f32 %v1371_v31, %v3064_v13  ;;  %v1707_v54 = vmul.f32 %v3008_v50, %v1377_v49 }
 0x248   :  { %v1704_v39 = vmul.f32 %v3034_v51, %v1291_v30 }
 0x249   :  { %v1706_v12 = vmul.f32 %v3040_v52, %v1372_v35  ;;  %v2470_v14 = vpop.f32.mrf.mxu0 }
 0x24a   :  { %v2477_v18 = vpop.f32.mrf.mxu1  ;;  %2494 = vmatprep.mubr.msk.f32.mxu0 %vm622_vm1, %v1704_v39  ;;  %v1458_v42 = vadd.f32 %v2470_v14, %v3078_v38 }
 0x24b   :  { %v1452_v43 = vpop.f32.mrf.mxu0  ;;  %2499 = vmatprep.mubr.msk.f32.mxu1 %vm622_vm1, %v1706_v12  ;;  %2495 = vmatmul.mubr.msk.f32.vlgmr.msra.gmra.mxu0 %vm622_vm1, %v1705_v47  ;;  %v1539_v55 = vadd.f32 %v2477_v18, %v3089_v60 }
 0x24c   :  { %v1453_v51 = vadd.f32 %v1452_v43, %v3109_v19  ;;  %v1533_v0 = vpop.f32.mrf.mxu1  ;;  %2500 = vmatmul.mubr.msk.f32.vlgmr.msra.gmra.mxu1 %vm622_vm1, %v1707_v54  ;;  %2503 = vmatpush3.msra.mxu0 %v2979_v16  ;;  %v1709_v58 = vmul.f32 %v3049_v56, %v1458_v42 }
 0x24d   :  { %v1534_v50 = vadd.f32 %v1533_v0, %v3117_v29  ;;  %2508 = vmatpush3.msra.mxu1 %v2964_v21  ;;  %2512 = vmatprep.subr.mxu0 %v2971_v59  ;;  %v1711_v13 = vmul.f32 %v3059_v57, %v1539_v55 }
 0x24e   :  { %v1708_v52 = vmul.f32 %v3069_v7, %v1453_v51  ;;  %v2484_v20 = vpop.f32.mrf.mxu0  ;;  %2517 = vmatprep.subr.mxu1 %v2979_v16 }
 0x24f   :  { %v1710_v9 = vmul.f32 %v3073_v34, %v1534_v50  ;;  %v2491_v53 = vpop.f32.mrf.mxu1  ;;  %v1620_v3 = vadd.f32 %v2484_v20, %v3120_v1 }
 0x250   :  { %v1614_v38 = vpop.f32.mrf.mxu0  ;;  %2504 = vmatprep.mubr.msk.f32.mxu0 %vm622_vm1, %v1708_v52  ;;  %v1701_v21 = vadd.f32 %v2491_v53, %v3130_v25 }
 0x251   :  { %v1615_v8 = vadd.f32 %v1614_v38, %v3141_v6  ;;  %v1695_v7 = vpop.f32.mrf.mxu1  ;;  %2509 = vmatprep.mubr.msk.f32.mxu1 %vm622_vm1, %v1710_v9  ;;  %2505 = vmatmul.mubr.msk.f32.vlgmr.msra.gmra.mxu0 %vm622_vm1, %v1709_v58  ;;  %v1713_v34 = vmul.f32 %v3083_v17, %v1620_v3 }
 0x252   :  { %v1696_v56 = vadd.f32 %v1695_v7, %v3147_v10  ;;  %2510 = vmatmul.mubr.msk.f32.vlgmr.msra.gmra.mxu1 %vm622_vm1, %v1711_v13  ;;  %2513 = vmatpush3.msra.mxu0 %v2971_v59  ;;  %v1715_v61 = vmul.f32 %v3097_v62, %v1701_v21 }
 0x253   :  { %v1712_v57 = vmul.f32 %v3111_v63, %v1615_v8  ;;  %2518 = vmatpush3.msra.mxu1 %v2979_v16 }
 0x254   :  { %v1714_v60 = vmul.f32 %v3125_v4, %v1696_v56 }
 0x255   :  { %2514 = vmatprep.mubr.msk.f32.mxu0 %vm622_vm1, %v1712_v57 }
 0x256   :  { %2519 = vmatprep.mubr.msk.f32.mxu1 %vm622_vm1, %v1714_v60  ;;  %2515 = vmatmul.mubr.msk.f32.vlgmr.msra.gmra.mxu0 %vm622_vm1, %v1713_v34 }
 0x257   :  { %2520 = vmatmul.mubr.msk.f32.vlgmr.msra.gmra.mxu1 %vm622_vm1, %v1715_v61 }
 0x258   :  { %2585 = shalt.err (!%p2582_p4)
}
 0x259   :  { %s2619_s20 = smov 128   ;;  %s2620_s21 = smov 8  }
 0x25a   :  { %2225 = dma.vmem_to_hbm [thread:$0]  %s2220_s19, 1536, %s3257_s5, [#allocation3], %s2619_s20, %s2619_s20, %s2620_s21  }
 0x25b   :  { %s2621_s5 = smov [#allocation4]  }
 0x25c   :  { %s2231_s23 = sshll.u32 %s2621_s5, 4  ;;  %s2232_s23 = int_to_ptr.vmem [resolvable:$true] %s2231_s23 }
 0x25d   :  { %s2594_s24 = scalar_lea.vmem %s2232_s23, 1536  ;;  %p2599_p6 = scmp.lt.s32.totalorder %s2232_s23, %s2232_s23 }
 0x25e   :  { %p2595_p5 = scmp.ne.s32.totalorder %s2232_s23, %s2594_s24  ;;  %p2600_p7 = scmp.lt.s32.totalorder %s2594_s24, %s2594_s24 }
 0x260   :  { %p2601_p8 = por %p2600_p7, %p2599_p6 }
 0x262   :  { %p2602_p9 = pnand %p2601_p8, %p2595_p5 }
 0x30b   :  { %v2496_v59 = vpop.f32.mrf.mxu0 }
 0x30c   :  { %2203 = vst.msk [vmem:[#allocation4 + $0x8] sm:$0xff] %vm1109_vm2, %v2496_v59  ;;  %v2501_v16 = vpop.f32.mrf.mxu1 }
 0x30d   :  { %2205 = vst.msk [vmem:[#allocation4 + $0x18] sm:$0xff] %vm1109_vm2, %v2501_v16  ;;  %v1788_v17 = vpop.f32.mrf.mxu0 }
 0x30e   :  { %2202 = vst.msk [vmem:[#allocation4] sm:$0xff] %vm1109_vm2, %v1788_v17  ;;  %v1869_v28 = vpop.f32.mrf.mxu1 }
 0x30f   :  { %2204 = vst.msk [vmem:[#allocation4 + $0x10] sm:$0xff] %vm1109_vm2, %v1869_v28 }
 0x311   :  { %v2506_v62 = vpop.f32.mrf.mxu0 }
 0x312   :  { %2207 = vst.msk [vmem:[#allocation4 + $0x28] sm:$0xff] %vm1109_vm2, %v2506_v62  ;;  %v2511_v26 = vpop.f32.mrf.mxu1 }
 0x313   :  { %2209 = vst.msk [vmem:[#allocation4 + $0x38] sm:$0xff] %vm1109_vm2, %v2511_v26  ;;  %v1950_v19 = vpop.f32.mrf.mxu0 }
 0x314   :  { %2206 = vst.msk [vmem:[#allocation4 + $0x20] sm:$0xff] %vm1109_vm2, %v1950_v19  ;;  %v2031_v63 = vpop.f32.mrf.mxu1 }
 0x315   :  { %2208 = vst.msk [vmem:[#allocation4 + $0x30] sm:$0xff] %vm1109_vm2, %v2031_v63 }
 0x316   :  { %v2516_v29 = vpop.f32.mrf.mxu0 }
 0x317   :  { %2211 = vst.msk [vmem:[#allocation4 + $0x48] sm:$0xff] %vm1109_vm2, %v2516_v29  ;;  %v2521_v1 = vpop.f32.mrf.mxu1 }
 0x318   :  { %2213 = vst.msk [vmem:[#allocation4 + $0x58] sm:$0xff] %vm1109_vm2, %v2521_v1  ;;  %v2112_v24 = vpop.f32.mrf.mxu0 }
 0x319   :  { %2210 = vst.msk [vmem:[#allocation4 + $0x40] sm:$0xff] %vm1109_vm2, %v2112_v24  ;;  %v2193_v4 = vpop.f32.mrf.mxu1 }
 0x31a   :  { %2212 = vst.msk [vmem:[#allocation4 + $0x50] sm:$0xff] %vm1109_vm2, %v2193_v4 }
 0x31b   :  { %2605 = shalt.err (!%p2602_p9)
}
 0x31c   :  { %2237 = dma.vmem_to_hbm [thread:$0]  %s2232_s23, 1536, %s3258_s6, [#allocation5], %s2619_s20, %s2619_s20, %s2620_s21  }
 0x31d   :  { %2614 = dma.done.wait [#allocation3], 1536  }
 0x31e   :  { %2615 = vsyncadd [#allocation3], 4294965760 }
 0x31f   :  { %2616 = dma.done.wait [#allocation5], 1536  }
 0x320   :  { %2617 = vsyncadd [#allocation5], 4294965760 }
 0x321   :  { %2244 = vsyncpa [#allocation3], 1 }
 0x322   :  { %2245 = vsyncpa [#allocation5], 1 }

</bundles_post_ra>
